<compile_context>
chip_gen: v5e
topology: v5e:2x2
jax: 0.10.0
libtpu: 0.0.40
codegen_flags: <defaults>
</compile_context>

<pallas_src>
import jax
import jax.numpy as jnp
from jax import lax
from jax.experimental import pallas as pl
from jax.experimental.pallas import tpu as pltpu


def _unicycle_kernel(x_ref, o_ref):
    # x_ref: (1, 5) f32 in SMEM  -> scalar reads on the scalar path.
    # o_ref: (1, 5) f32 in VMEM.
    theta = x_ref[0, 2]
    v = x_ref[0, 3]
    omega = x_ref[0, 4]

    shape = o_ref.shape                                   # (1, 5)
    lane = lax.broadcasted_iota(jnp.int32, shape, 1)      # lane ids 0..4

    # Scalar -> tiny vector broadcast; cos/sin are single EUP pushes.
    theta_vec = jnp.full(shape, theta, dtype=jnp.float32)
    x_dot = v * jnp.cos(theta_vec)
    y_dot = v * jnp.sin(theta_vec)
    omega_vec = jnp.full(shape, omega, dtype=jnp.float32)
    zeros = jnp.zeros(shape, jnp.float32)

    out = jnp.where(lane == 0, x_dot,
          jnp.where(lane == 1, y_dot,
          jnp.where(lane == 2, omega_vec, zeros)))
    o_ref[...] = out.astype(o_ref.dtype)


def unicycle_dynamics(t, x_and_u):
    """Pallas equivalent of UnicycleDynamics.forward(t, x_and_u).

    t is accepted (torchdiffeq API) but unused.
    x_and_u: (1, 5) float32 exactly (the torch module indexes [0, :3]/[0, 3:]).
    Returns (1, 5) float32 dx/dt.
    """
    del t  # unused, as in the reference module
    xu = jnp.asarray(x_and_u, dtype=jnp.float32)
    assert xu.ndim == 2 and xu.shape == (1, 5), f"expected (1, 5), got {xu.shape}"

    return pl.pallas_call(
        _unicycle_kernel,
        out_shape=jax.ShapeDtypeStruct((1, 5), jnp.float32),
        in_specs=[pl.BlockSpec(memory_space=pltpu.MemorySpace.SMEM)],
        out_specs=pl.BlockSpec(memory_space=pltpu.MemorySpace.VMEM),
    )(xu)


if __name__ == "__main__":
    key = jax.random.PRNGKey(0)
    # x_and_u = [x, y, theta, v, omega], shape (1, 5)
    x_and_u = jax.random.normal(key, (1, 5), dtype=jnp.float32)
    t = jnp.float32(0.0)

    dxdt = unicycle_dynamics(t, x_and_u)
    dxdt = jax.block_until_ready(dxdt)

    # Reference check in plain JAX.
    theta = x_and_u[0, 2]
    v = x_and_u[0, 3]
    omega = x_and_u[0, 4]
    ref = jnp.stack([v * jnp.cos(theta), v * jnp.sin(theta), omega,
                     jnp.float32(0.0), jnp.float32(0.0)])[None, :]
    assert dxdt.shape == (1, 5)
    assert jnp.allclose(dxdt, ref, atol=1e-6), (dxdt, ref)

    print("KERNEL_OK")
</pallas_src>

<mosaic_0001>
module attributes {stable_mosaic.version = 11 : i64} {
  func.func @_unicycle_kernel(%arg0: memref<1x5xf32, #tpu.memory_space<smem>>, %arg1: memref<1x5xf32, #tpu.memory_space<vmem>>) attributes {dimension_semantics = [], scalar_prefetch = 0 : i64, scratch_operands = 0 : i64, tpu.core_type = #tpu.core_type<tc>} {
    %c0 = arith.constant 0 : index
    %c2 = arith.constant 2 : index
    %0 = memref.load %arg0[%c0, %c2] : memref<1x5xf32, #tpu.memory_space<smem>>
    %c0_0 = arith.constant 0 : index
    %c3 = arith.constant 3 : index
    %1 = memref.load %arg0[%c0_0, %c3] : memref<1x5xf32, #tpu.memory_space<smem>>
    %c0_1 = arith.constant 0 : index
    %c4 = arith.constant 4 : index
    %2 = memref.load %arg0[%c0_1, %c4] : memref<1x5xf32, #tpu.memory_space<smem>>
    %3 = tpu.iota {dimensions = array<i32: 1>} : vector<1x5xi32>
    %4 = vector.broadcast %0 : f32 to vector<1x5xf32>
    %5 = math.cos %4 : vector<1x5xf32>
    %6 = vector.broadcast %1 : f32 to vector<1x5xf32>
    %7 = arith.mulf %6, %5 : vector<1x5xf32>
    %8 = math.sin %4 : vector<1x5xf32>
    %9 = vector.broadcast %1 : f32 to vector<1x5xf32>
    %10 = arith.mulf %9, %8 : vector<1x5xf32>
    %11 = vector.broadcast %2 : f32 to vector<1x5xf32>
    %cst = arith.constant 0.000000e+00 : f32
    %12 = vector.broadcast %cst : f32 to vector<1x5xf32>
    %c0_i32 = arith.constant 0 : i32
    %13 = vector.broadcast %c0_i32 : i32 to vector<1x5xi32>
    %14 = arith.cmpi eq, %3, %13 : vector<1x5xi32>
    %c1_i32 = arith.constant 1 : i32
    %15 = vector.broadcast %c1_i32 : i32 to vector<1x5xi32>
    %16 = arith.cmpi eq, %3, %15 : vector<1x5xi32>
    %c2_i32 = arith.constant 2 : i32
    %17 = vector.broadcast %c2_i32 : i32 to vector<1x5xi32>
    %18 = arith.cmpi eq, %3, %17 : vector<1x5xi32>
    %19 = arith.select %18, %11, %12 : vector<1x5xi1>, vector<1x5xf32>
    %20 = arith.select %16, %10, %19 : vector<1x5xi1>, vector<1x5xf32>
    %21 = arith.select %14, %7, %20 : vector<1x5xi1>, vector<1x5xf32>
    %c0_2 = arith.constant 0 : index
    %c0_3 = arith.constant 0 : index
    %22 = vector.load %arg1[%c0_2, %c0_3] : memref<1x5xf32, #tpu.memory_space<vmem>>, vector<1x5xf32>
    tpu.vector_store %arg1[%c0_2, %c0_3], %21 {strides = array<i32>} : memref<1x5xf32, #tpu.memory_space<vmem>>, vector<1x5xf32>,
    return
  }
}

</mosaic_0001>

<bundles_post_ra>
// kernel: tpu_custom_call.1
= control target key start
LH: loop header
LB: loop body
LE: loop exit
PB: predicated region body
PF: predicated region fallthrough
CT: control target
= control target key end

     0   :  { %6 = vsyncpa [#allocation4], 0  ;;  %s501_s0 = inlined_call_operand.hbm [shape: f32[1,5], index: 0, kind: input, shape index: {}]   ;;  %s502_s1 = inlined_call_operand.hbm [shape: f32[1,5], index: 1, kind: output, shape index: {}]  }
   0x1   :  { %7 = vsyncpa [#allocation3], 0  ;;  %s13_s8 = sshll.u32 %s501_s0, 4  ;;  %s424_s9 = smov [#allocation2]   ;;  %s14_s8 = int_to_ptr.hbm [resolvable:$true] %s13_s8 }
   0x2   :  { %16 = dma.hbm_to_smem %s14_s8, 16, %s424_s9, [#allocation4]  }
   0x3   :  { %420 = dma.done.wait [#allocation4], 16  }
   0x4   :  { %421 = vsyncadd [#allocation4], 4294967280 }
   0x5   :  { %21 = sfence }
   0x6   :  { %s366_s10 = sld [smem:[#allocation2 + $0x2]]  ;;  %v425_v12 = vmov 683565275   ;;  %v426_v14 = vmov 2475754826   ;;  %s432_s12 = smov [#allocation5]  }
   0x7   :  { %v427_v16 = vmov 2131351028   ;;  %v428_v18 = vmov 2102212464   ;;  %v429_v20 = vmov 920167782  }
   0x8   :  { %v430_v26 = vmov 1326507024   ;;  %s491_s0 = sld [smem:[#allocation2 + $0x4]]  ;;  %s354_s13 = sshll.u32 %s432_s12, 4  ;;  %s355_s13 = int_to_ptr.vmem [resolvable:$true] %s354_s13 }
   0x9   :  { %s493_s11 = sld [smem:[#allocation2 + $0x3]]  ;;  %s356_s16 = sshll.u32 %s502_s1, 4  ;;  %s357_s16 = int_to_ptr.hbm [resolvable:$true] %s356_s16 }
   0xc   :  { %v446_v0 = vstv %s366_s10 }
   0xd   :  { %v31_v1 = vand.u32 2139095040, %v446_v0  ;;  %v28_v3 = vand.u32 2147483647, %v446_v0  ;;  %vm30_vm12 = vcmp.lt.s32.totalorder %v446_v0, 0 }
   0xf   :  { %v32_v2 = vshrl.u32 %v31_v1, 23  ;;  %v35_v6 = vand.u32 8388607, %v28_v3  ;;  %v431_v1 = vmov 0   ;;  %vm29_vm13 = vcmp.le.f32.partialorder %v28_v3, 0.7853982 }
  0x11   :  { %v369_v4 = vadd.s32 4294967169, %v32_v2  ;;  %v36_v9 = vor.u32 8388608, %v35_v6 }
  0x13   :  { %v38_v5 = vadd.s32 1, %v369_v4  ;;  %v455_v28 = vshll.u32 %v36_v9, 8 }
  0x15   :  { %vm39_vm0 = vcmp.gt.s32.totalorder %v38_v5, 0  ;;  %v77_v40 = vand.u32 65535, %v455_v28  ;;  %v78_v41 = vshrl.u32 %v455_v28, 16 }
  0x16   :  { %v40_v7 = vsel %vm39_vm0, %v38_v5, 0 }
  0x17   :  { %v42_v8 = vand.u32 31, %v40_v7  ;;  %v452_v10 = vshrl.u32 %v40_v7, 5 }
  0x19   :  { %v43_v11 = vsub.s32 32, %v42_v8  ;;  %v45_v13 = vshll.u32 %v425_v12, %v42_v8  ;;  %v48_v15 = vshll.u32 %v426_v14, %v42_v8  ;;  %v51_v17 = vshll.u32 %v427_v16, %v42_v8 }
  0x1a   :  { %v54_v19 = vshll.u32 %v428_v18, %v42_v8  ;;  %v57_v21 = vshll.u32 %v429_v20, %v42_v8  ;;  %vm60_vm1 = vcmp.lt.s32.totalorder %v452_v10, 1  ;;  %vm63_vm2 = vcmp.lt.s32.totalorder %v452_v10, 4 }
  0x1b   :  { %v46_v22 = vshrl.u32 %v426_v14, %v43_v11  ;;  %v49_v23 = vshrl.u32 %v427_v16, %v43_v11  ;;  %v52_v24 = vshrl.u32 %v428_v18, %v43_v11  ;;  %v55_v25 = vshrl.u32 %v429_v20, %v43_v11 }
  0x1c   :  { %v58_v27 = vshrl.u32 %v430_v26, %v43_v11  ;;  %vm62_vm3 = vcmp.lt.s32.totalorder %v452_v10, 3  ;;  %vm61_vm4 = vcmp.lt.s32.totalorder %v452_v10, 2  ;;  %v44_v48 = vshrl.u32 %v425_v12, %v43_v11 }
  0x1d   :  { %v47_v29 = vor.u32 %v46_v22, %v45_v13  ;;  %v50_v30 = vor.u32 %v49_v23, %v48_v15  ;;  %v53_v31 = vor.u32 %v52_v24, %v51_v17  ;;  %v56_v32 = vor.u32 %v55_v25, %v54_v19 }
  0x1e   :  { %v59_v33 = vor.u32 %v58_v27, %v57_v21 }
  0x1f   :  { %v68_v34 = vsel %vm60_vm1, %v47_v29, %v50_v30  ;;  %v72_v35 = vsel %vm60_vm1, %v50_v30, %v53_v31  ;;  %v69_v36 = vsel %vm63_vm2, %v56_v32, 920167782  ;;  %v64_v61 = vsel %vm60_vm1, %v44_v48, %v47_v29 }
  0x20   :  { %v73_v37 = vsel %vm63_vm2, %v59_v33, 1326507024  ;;  %v70_v38 = vsel %vm62_vm3, %v53_v31, %v69_v36  ;;  %v65_v63 = vsel %vm63_vm2, %v53_v31, 2102212464 }
  0x21   :  { %v74_v39 = vsel %vm62_vm3, %v56_v32, %v73_v37  ;;  %v71_v42 = vsel %vm61_vm4, %v68_v34, %v70_v38  ;;  %v66_v12 = vsel %vm62_vm3, %v50_v30, %v65_v63 }
  0x22   :  { %v75_v43 = vsel %vm61_vm4, %v72_v35, %v74_v39  ;;  %v101_v46 = vand.u32 65535, %v71_v42  ;;  %v102_v47 = vshrl.u32 %v71_v42, 16  ;;  %v67_v20 = vsel %vm61_vm4, %v64_v61, %v66_v12 }
  0x23   :  { %v79_v44 = vand.u32 65535, %v75_v43  ;;  %v80_v45 = vshrl.u32 %v75_v43, 16  ;;  %v121_v24 = vmul.u32 %v455_v28, %v67_v20  ;;  %vm171_vm4 = vweird.f32 %v446_v0 }
  0x24   :  { %v103_v52 = vmul.u32 %v101_v46, %v77_v40  ;;  %v104_v53 = vmul.u32 %v102_v47, %v77_v40  ;;  %v105_v54 = vmul.u32 %v101_v46, %v78_v41  ;;  %v106_v58 = vmul.u32 %v102_v47, %v78_v41 }
  0x25   :  { %v81_v49 = vmul.u32 %v79_v44, %v77_v40  ;;  %v82_v50 = vmul.u32 %v80_v45, %v77_v40  ;;  %v83_v51 = vmul.u32 %v79_v44, %v78_v41  ;;  %v84_v55 = vmul.u32 %v80_v45, %v78_v41 }
  0x26   :  { %v107_v59 = vshll.u32 %v104_v53, 16  ;;  %v109_v60 = vshll.u32 %v105_v54, 16  ;;  %v108_v9 = vshrl.u32 %v104_v53, 16  ;;  %v110_v16 = vshrl.u32 %v105_v54, 16 }
  0x27   :  { %v85_v56 = vshll.u32 %v82_v50, 16  ;;  %v87_v57 = vshll.u32 %v83_v51, 16  ;;  %v86_v5 = vshrl.u32 %v82_v50, 16  ;;  %v88_v13 = vshrl.u32 %v83_v51, 16 }
  0x28   :  { %vm111_vm6 = vc.u32 %v103_v52, %v107_v59  ;;  %v113_v4 = vadd.s32 %v107_v59, %v103_v52 }
  0x29   :  { %vm89_vm5 = vc.u32 %v81_v49, %v85_v56  ;;  %v91_v62 = vadd.s32 %v85_v56, %v81_v49  ;;  %v112_v7 = vsel %vm111_vm6, 1, %v431_v1 }
  0x2a   :  { %v90_v2 = vsel %vm89_vm5, 1, %v431_v1  ;;  %v114_v11 = vadd.s32 %v112_v7, %v106_v58  ;;  %vm115_vm8 = vc.u32 %v113_v4, %v109_v60  ;;  %v117_v19 = vadd.s32 %v113_v4, %v109_v60 }
  0x2b   :  { %v92_v6 = vadd.s32 %v90_v2, %v84_v55  ;;  %vm93_vm7 = vc.u32 %v91_v62, %v87_v57  ;;  %v116_v15 = vsel %vm115_vm8, 1, %v431_v1  ;;  %vm347_vm8 = vcmask 32768  }
  0x2c   :  { %v94_v8 = vsel %vm93_vm7, 1, %v431_v1  ;;  %v118_v17 = vadd.s32 %v116_v15, %v114_v11  ;;  %v25_v1 = vlaneseq  ;;  %v340_v15 = vstv %s491_s0 }
  0x2d   :  { %v96_v14 = vadd.s32 %v94_v8, %v92_v6 }
  0x2e   :  { %v119_v21 = vadd.s32 %v118_v17, %v108_v9  ;;  %v26_v8 = vand.u32 127, %v25_v1  ;;  %v182_v17 = vstv %s493_s11 }
  0x2f   :  { %v97_v18 = vadd.s32 %v96_v14, %v86_v5 }
  0x30   :  { %v120_v23 = vadd.s32 %v119_v21, %v110_v16  ;;  %vm343_vm5 = vcmp.eq.s32.totalorder %v26_v8, 2  ;;  %vm342_vm6 = vcmp.eq.s32.totalorder %v26_v8, 1  ;;  %vm341_vm7 = vcmp.eq.s32.totalorder %v26_v8, 0 }
  0x31   :  { %v98_v22 = vadd.s32 %v97_v18, %v88_v13 }
  0x32   :  { %v124_v25 = vadd.s32 1, %v120_v23 }
  0x33   :  { %vm123_vm9 = vc.u32 %v98_v22, %v117_v19  ;;  %v122_v10 = vadd.s32 %v117_v19, %v98_v22 }
  0x34   :  { %v125_v26 = vsel %vm123_vm9, %v124_v25, %v120_v23  ;;  %v344_v23 = vsel %vm343_vm5, %v340_v15, 0.0 }
  0x35   :  { %v126_v27 = vadd.s32 %v125_v26, %v121_v24 }
  0x37   :  { %v127_v29 = vadd.s32 536870912, %v126_v27 }
  0x39   :  { %v128_v30 = vshrl.u32 %v127_v29, 30 }
  0x3b   :  { %v129_v31 = vshll.u32 %v128_v30, 30  ;;  %v152_v48 = vsub.s32 4, %v128_v30 }
  0x3d   :  { %v130_v32 = vsub.s32 %v126_v27, %v129_v31  ;;  %v153_v51 = vsel %vm30_vm12, %v152_v48, %v128_v30 }
  0x3e   :  { %v155_v54 = vsel %vm29_vm13, 0, %v153_v51 }
  0x3f   :  { %vm131_vm10 = vcmp.lt.s32.totalorder %v130_v32, 0  ;;  %v132_v33 = vsub.s32 0, %v130_v32  ;;  %v328_v59 = vadd.s32 3, %v155_v54  ;;  %v172_v3 = vand.u32 3, %v155_v54 }
  0x41   :  { %v133_v34 = vsel %vm131_vm10, %v132_v33, %v130_v32  ;;  %v329_v2 = vand.u32 3, %v328_v59  ;;  %vm177_vm14 = vcmp.eq.s32.totalorder %v172_v3, 2  ;;  %vm173_vm0 = vcmp.lt.s32.totalorder %v172_v3, 2 }
  0x42   :  { %v134_v35 = vclz %v133_v34  ;;  %vm174_vm1 = vcmp.eq.s32.totalorder %v172_v3, 0 }
  0x43   :  { %vm334_vm15 = vcmp.eq.s32.totalorder %v329_v2, 2  ;;  %vm331_vm2 = vcmp.eq.s32.totalorder %v329_v2, 0  ;;  %vm330_vm3 = vcmp.lt.s32.totalorder %v329_v2, 2 }
  0x44   :  { %v370_v36 = vadd.s32 4294967294, %v134_v35 }
  0x46   :  { %vm371_vm11 = vcmp.lt.s32.totalorder %v370_v36, 0 }
  0x47   :  { %v137_v37 = vsel %vm371_vm11, 0, %v370_v36 }
  0x48   :  { %v138_v38 = vsub.s32 32, %v137_v37  ;;  %v139_v39 = vshll.u32 %v130_v32, %v137_v37  ;;  %v142_v40 = vsub.s32 4294967266, %v137_v37 }
  0x4a   :  { %v140_v28 = vshrl.u32 %v122_v10, %v138_v38  ;;  %v143_v41 = vadd.s32 127, %v142_v40 }
  0x4c   :  { %v141_v42 = vor.u32 %v140_v28, %v139_v39  ;;  %v144_v43 = vshll.u32 %v143_v41, 23 }
  0x4e   :  { %v145_v44 = vor.u32 4788187, %v144_v43  ;;  %v148_v45 = vcvt.s32.f32 %v141_v42 }
  0x50   :  { %v146_v46 = vand.u32 2147483647, %v145_v44 }
  0x52   :  { %v149_v47 = vmul.f32 %v148_v45, %v146_v46 }
  0x54   :  { %v150_v49 = vxor.u32 2147483648, %v149_v47 }
  0x56   :  { %v151_v50 = vsel %vm30_vm12, %v150_v49, %v149_v47 }
  0x57   :  { %v154_v52 = vsel %vm29_vm13, %v446_v0, %v151_v50 }
  0x58   :  { %v156_v53 = vmul.f32 %v154_v52, %v154_v52 }
  0x5a   :  { %v157_v55 = vmul.f32 -0.001358992, %v156_v53  ;;  %v164_v56 = vmul.f32 -0.00019511016, %v156_v53 }
  0x5c   :  { %v158_v57 = vadd.f32 0.041655596, %v157_v55  ;;  %v165_v58 = vadd.f32 0.008332121, %v164_v56 }
  0x5e   :  { %v159_v60 = vmul.f32 %v158_v57, %v156_v53  ;;  %v166_v61 = vmul.f32 %v165_v58, %v156_v53 }
  0x60   :  { %v160_v62 = vadd.f32 -0.4999988, %v159_v60  ;;  %v167_v63 = vadd.f32 -0.16666654, %v166_v61 }
  0x62   :  { %v161_v4 = vmul.f32 %v160_v62, %v156_v53  ;;  %v168_v5 = vmul.f32 %v167_v63, %v156_v53 }
  0x64   :  { %v162_v6 = vadd.f32 1.0, %v161_v4  ;;  %v169_v7 = vadd.f32 1.0, %v168_v5 }
  0x66   :  { %v170_v9 = vmul.f32 %v169_v7, %v154_v52  ;;  %v178_v11 = vxor.u32 2147483648, %v162_v6 }
  0x68   :  { %v175_v12 = vxor.u32 2147483648, %v170_v9  ;;  %v179_v13 = vsel %vm177_vm14, %v178_v11, %v170_v9  ;;  %v336_v14 = vsel %vm334_vm15, %v178_v11, %v170_v9 }
  0x6a   :  { %v176_v16 = vsel %vm174_vm1, %v162_v6, %v175_v12  ;;  %v333_v18 = vsel %vm331_vm2, %v162_v6, %v175_v12 }
  0x6b   :  { %v180_v19 = vsel %vm173_vm0, %v176_v16, %v179_v13  ;;  %v337_v20 = vsel %vm330_vm3, %v333_v18, %v336_v14 }
  0x6c   :  { %v181_v21 = vsel %vm171_vm4, nan, %v180_v19  ;;  %v338_v22 = vsel %vm171_vm4, nan, %v337_v20 }
  0x6d   :  { %v183_v24 = vmul.f32 %v182_v17, %v181_v21  ;;  %v339_v25 = vmul.f32 %v338_v22, %v182_v17 }
  0x6f   :  { %v345_v0 = vsel %vm342_vm6, %v339_v25, %v344_v23 }
  0x70   :  { %v346_v26 = vsel %vm341_vm7, %v183_v24, %v345_v0 }
  0x71   :  { %348 = vst.msk [vmem:[#allocation5] sm:$0x1] %vm347_vm8, %v346_v26 }
  0x72   :  { %359 = dma.vmem_to_hbm [thread:$0]  %s355_s13, 16, %s357_s16, [#allocation3]  }
  0x73   :  { %422 = dma.done.wait [#allocation3], 16  }
  0x74   :  { %423 = vsyncadd [#allocation3], 4294967280 }
  0x75   :  { %364 = vsyncpa [#allocation3], 1 }
  0x76   :  { %365 = vsyncpa [#allocation4], 1 }

</bundles_post_ra>
